<compile_context>
chip_gen: v7x
topology: tpu7x:2x2x1
jax: 0.10.0
libtpu: 0.0.40
codegen_flags: <defaults>
</compile_context>

<pallas_src>
import jax
import jax.numpy as jnp
from jax import lax
from jax.experimental import pallas as pl
from jax.experimental.pallas import tpu as pltpu


def _encoder_gru_kernel(ids_ref, emb_ref, wih_ref, whh_ref, bih_ref, bhh_ref,
                        out_ref):
    """Single-invocation GRU encoder (embedding + relu + GRU).

    ids_ref : (T*B, 1) int32  token ids, time-major
    emb_ref : (V, E)          embedding table
    wih_ref : (3H, E)         input-to-hidden weights (PyTorch layout; r,z,n)
    whh_ref : (3H, H)         hidden-to-hidden weights (PyTorch layout)
    bih_ref : (1, 3H)         b_ih
    bhh_ref : (1, 3H)         b_hh
    out_ref : (B, T*H)        per-timestep hidden states, lane-dense
    """
    B = out_ref.shape[0]
    H = whh_ref.shape[1]
    TB = ids_ref.shape[0]
    T = TB // B
    V = emb_ref.shape[0]

    # ---- embedding lookup as a one-hot matmul (vocab is tiny) -------------
    ids = ids_ref[...]                                                # (TB, 1)
    vocab_iota = lax.broadcasted_iota(jnp.int32, (TB, V), 1)          # (TB, V)
    onehot = (ids == vocab_iota).astype(jnp.float32)                  # (TB, V)

    # ReLU(embedding) + input projection for ALL timesteps (off the recurrence).
    emb_relu = jnp.maximum(emb_ref[...], 0.0)                         # (V, E)
    x = jnp.dot(onehot, emb_relu,
                preferred_element_type=jnp.float32)                   # (TB, E)
    wih_t = jnp.transpose(wih_ref[...])                               # (E, 3H)
    gi = jnp.dot(x, wih_t,
                 preferred_element_type=jnp.float32) + bih_ref[...]   # (TB, 3H)

    # Fold b_hr / b_hz into the precomputed activations; keep b_hn separate
    # (it is multiplied by the reset gate on the serial path).
    bhh = bhh_ref[...]                                                # (1, 3H)
    gi_rz = gi[:, :2 * H] + bhh[:, :2 * H]                            # (TB, 2H)
    gi_n = gi[:, 2 * H:]                                              # (TB, H)
    b_hn = bhh[:, 2 * H:]                                             # (1, H)

    whh_t = jnp.transpose(whh_ref[...])                               # (H, 3H)

    # ---- serial recurrence (fully unrolled; T is small & static) ----------
    # t = 0: previous hidden state is zero -> the hidden matmul vanishes.
    rz0 = jax.nn.sigmoid(gi_rz[0:B, :])                               # (B, 2H)
    n0 = jnp.tanh(gi_n[0:B, :] + rz0[:, :H] * b_hn)
    h = (1.0 - rz0[:, H:]) * n0
    out_ref[:, 0:H] = h.astype(out_ref.dtype)

    for t in range(1, T):
        gh = jnp.dot(h, whh_t, preferred_element_type=jnp.float32)    # (B, 3H)
        rz = jax.nn.sigmoid(gi_rz[t * B:(t + 1) * B, :] + gh[:, :2 * H])
        r = rz[:, :H]
        z = rz[:, H:]
        n = jnp.tanh(gi_n[t * B:(t + 1) * B, :] + r * (gh[:, 2 * H:] + b_hn))
        h = (1.0 - z) * n + z * h
        out_ref[:, t * H:(t + 1) * H] = h.astype(out_ref.dtype)


def encoder_forward(token_ids, params):
    """Full Encoder.forward: embedding -> relu -> GRU.

    token_ids: (B, T) int32
    Returns: (encoder_outputs (B, T, H), encoder_hidden (1, B, H))
    """
    B, T = token_ids.shape
    H = params["w_hh"].shape[1]

    # Time-major flat ids (row t*B + b  <->  token_ids[b, t]); tiny int op.
    ids_tm = jnp.transpose(token_ids).reshape(T * B, 1).astype(jnp.int32)
    bih = params["b_ih"].astype(jnp.float32).reshape(1, 3 * H)
    bhh = params["b_hh"].astype(jnp.float32).reshape(1, 3 * H)

    # Single kernel invocation (no grid); all operands live in VMEM
    # (total working set ~20 KiB). Output is a lane-dense (B, T*H) slab
    # written back with one DMA.
    # TODO(synk): for large B on v7x, add a leading "parallel" batch grid axis
    # so both TensorCores get a batch shard; pointless at B=2.
    out_flat = pl.pallas_call(
        _encoder_gru_kernel,
        out_shape=jax.ShapeDtypeStruct((B, T * H), jnp.float32),
        in_specs=[pl.BlockSpec(memory_space=pltpu.MemorySpace.VMEM)] * 6,
        out_specs=pl.BlockSpec(memory_space=pltpu.MemorySpace.VMEM),
    )(
        ids_tm,
        params["embedding"].astype(jnp.float32),
        params["w_ih"].astype(jnp.float32),
        params["w_hh"].astype(jnp.float32),
        bih,
        bhh,
    )

    encoder_outputs = out_flat.reshape(B, T, H)                        # (B, T, H)
    encoder_hidden = encoder_outputs[:, -1, :][None]                   # (1, B, H)
    return encoder_outputs, encoder_hidden


def _reference_forward(token_ids, params):
    """Pure-JAX reference (lax.scan) mirroring torch.nn.GRU semantics."""
    emb = jnp.take(params["embedding"], token_ids, axis=0)
    x = jnp.maximum(jnp.transpose(emb, (1, 0, 2)), 0.0)                # (T, B, E)
    H = params["w_hh"].shape[1]
    B = token_ids.shape[0]
    wih_t = params["w_ih"].T
    whh_t = params["w_hh"].T
    bih = params["b_ih"]
    bhh = params["b_hh"]

    def step(h, x_t):
        gi = x_t @ wih_t + bih
        gh = h @ whh_t + bhh
        r = jax.nn.sigmoid(gi[:, :H] + gh[:, :H])
        z = jax.nn.sigmoid(gi[:, H:2 * H] + gh[:, H:2 * H])
        n = jnp.tanh(gi[:, 2 * H:] + r * gh[:, 2 * H:])
        h_new = (1.0 - z) * n + z * h
        return h_new, h_new

    h0 = jnp.zeros((B, H), jnp.float32)
    h_fin, outs = lax.scan(step, h0, x)
    return jnp.transpose(outs, (1, 0, 2)), h_fin[None]


if __name__ == "__main__":
    # Small deterministic config.
    VOCAB, EMBED, HIDDEN = 20, 32, 32
    BATCH, SEQ = 2, 8

    key = jax.random.PRNGKey(0)
    k_emb, k_wih, k_whh, k_bih, k_bhh, k_tok = jax.random.split(key, 6)
    params = {
        "embedding": jax.random.normal(k_emb, (VOCAB, EMBED), jnp.float32) * 0.1,
        "w_ih": jax.random.normal(k_wih, (3 * HIDDEN, EMBED), jnp.float32) * 0.1,
        "w_hh": jax.random.normal(k_whh, (3 * HIDDEN, HIDDEN), jnp.float32) * 0.1,
        "b_ih": jax.random.normal(k_bih, (3 * HIDDEN,), jnp.float32) * 0.1,
        "b_hh": jax.random.normal(k_bhh, (3 * HIDDEN,), jnp.float32) * 0.1,
    }
    token_ids = jax.random.randint(k_tok, (BATCH, SEQ), 0, VOCAB, jnp.int32)

    outputs, hidden = jax.jit(encoder_forward)(token_ids, params)
    jax.block_until_ready((outputs, hidden))

    ref_out, ref_hid = _reference_forward(token_ids, params)
    assert outputs.shape == (BATCH, SEQ, HIDDEN)
    assert hidden.shape == (1, BATCH, HIDDEN)
    assert jnp.allclose(outputs, ref_out, atol=1e-5, rtol=1e-5)
    assert jnp.allclose(hidden, ref_hid, atol=1e-5, rtol=1e-5)

    # TODO(synk): LSTM / bidirectional / multi-layer-with-dropout variants of the
    # reference module are not instantiated here (config picked GRU, 1 layer, unidir).
    print("KERNEL_OK")
</pallas_src>

<mosaic_0001>
module attributes {stable_mosaic.version = 11 : i64} {
  func.func @_encoder_gru_kernel(%arg0: memref<16x1xi32, #tpu.memory_space<vmem>>, %arg1: memref<20x32xf32, #tpu.memory_space<vmem>>, %arg2: memref<96x32xf32, #tpu.memory_space<vmem>>, %arg3: memref<96x32xf32, #tpu.memory_space<vmem>>, %arg4: memref<1x96xf32, #tpu.memory_space<vmem>>, %arg5: memref<1x96xf32, #tpu.memory_space<vmem>>, %arg6: memref<2x256xf32, #tpu.memory_space<vmem>>) attributes {dimension_semantics = [], scalar_prefetch = 0 : i64, scratch_operands = 0 : i64, tpu.core_type = #tpu.core_type<tc>} {
    %c0 = arith.constant 0 : index
    %c0_0 = arith.constant 0 : index
    %0 = vector.load %arg0[%c0, %c0_0] : memref<16x1xi32, #tpu.memory_space<vmem>>, vector<16x1xi32>
    %1 = tpu.iota {dimensions = array<i32: 1>} : vector<16x20xi32>
    %2 = vector.broadcast %0 : vector<16x1xi32> to vector<16x20xi32>
    %3 = arith.cmpi eq, %2, %1 : vector<16x20xi32>
    %4 = arith.extui %3 : vector<16x20xi1> to vector<16x20xi32>
    %5 = arith.sitofp %4 : vector<16x20xi32> to vector<16x20xf32>
    %c0_1 = arith.constant 0 : index
    %c0_2 = arith.constant 0 : index
    %6 = vector.load %arg1[%c0_1, %c0_2] : memref<20x32xf32, #tpu.memory_space<vmem>>, vector<20x32xf32>
    %cst = arith.constant 0.000000e+00 : f32
    %7 = vector.broadcast %cst : f32 to vector<20x32xf32>
    %8 = arith.maximumf %6, %7 : vector<20x32xf32>
    %cst_3 = arith.constant dense<0.000000e+00> : vector<16x32xf32>
    %9 = tpu.matmul %5, %8, %cst_3 {dimension_numbers = #tpu.dot_dimension_numbers<[1], [0], [0], [1], [0, 0, 1, 1], [], []>} : vector<16x20xf32>, vector<20x32xf32>, vector<16x32xf32> -> vector<16x32xf32>
    %c0_4 = arith.constant 0 : index
    %c0_5 = arith.constant 0 : index
    %10 = vector.load %arg2[%c0_4, %c0_5] : memref<96x32xf32, #tpu.memory_space<vmem>>, vector<96x32xf32>
    %11 = tpu.transpose %10, [1, 0] : vector<96x32xf32> -> vector<32x96xf32>
    %cst_6 = arith.constant dense<0.000000e+00> : vector<16x96xf32>
    %12 = tpu.matmul %9, %11, %cst_6 {dimension_numbers = #tpu.dot_dimension_numbers<[1], [0], [0], [1], [0, 0, 1, 1], [], []>} : vector<16x32xf32>, vector<32x96xf32>, vector<16x96xf32> -> vector<16x96xf32>
    %c0_7 = arith.constant 0 : index
    %c0_8 = arith.constant 0 : index
    %13 = vector.load %arg4[%c0_7, %c0_8] : memref<1x96xf32, #tpu.memory_space<vmem>>, vector<1x96xf32>
    %14 = vector.broadcast %13 : vector<1x96xf32> to vector<16x96xf32>
    %15 = arith.addf %12, %14 : vector<16x96xf32>
    %c0_9 = arith.constant 0 : index
    %c0_10 = arith.constant 0 : index
    %16 = vector.load %arg5[%c0_9, %c0_10] : memref<1x96xf32, #tpu.memory_space<vmem>>, vector<1x96xf32>
    %17 = vector.extract_strided_slice %15 {offsets = [0, 0], sizes = [16, 64], strides = [1, 1]} : vector<16x96xf32> to vector<16x64xf32>
    %18 = vector.extract_strided_slice %16 {offsets = [0, 0], sizes = [1, 64], strides = [1, 1]} : vector<1x96xf32> to vector<1x64xf32>
    %19 = vector.broadcast %18 : vector<1x64xf32> to vector<16x64xf32>
    %20 = arith.addf %17, %19 : vector<16x64xf32>
    %21 = vector.extract_strided_slice %15 {offsets = [0, 64], sizes = [16, 32], strides = [1, 1]} : vector<16x96xf32> to vector<16x32xf32>
    %22 = vector.extract_strided_slice %16 {offsets = [0, 64], sizes = [1, 32], strides = [1, 1]} : vector<1x96xf32> to vector<1x32xf32>
    %c0_11 = arith.constant 0 : index
    %c0_12 = arith.constant 0 : index
    %23 = vector.load %arg3[%c0_11, %c0_12] : memref<96x32xf32, #tpu.memory_space<vmem>>, vector<96x32xf32>
    %24 = tpu.transpose %23, [1, 0] : vector<96x32xf32> -> vector<32x96xf32>
    %25 = vector.extract_strided_slice %20 {offsets = [0, 0], sizes = [2, 64], strides = [1, 1]} : vector<16x64xf32> to vector<2x64xf32>
    %26 = arith.negf %25 : vector<2x64xf32>
    %27 = math.exp %26 : vector<2x64xf32>
    %cst_13 = arith.constant 1.000000e+00 : f32
    %28 = vector.broadcast %cst_13 : f32 to vector<2x64xf32>
    %29 = arith.addf %28, %27 : vector<2x64xf32>
    %30 = arith.divf %28, %29 : vector<2x64xf32>
    %31 = vector.extract_strided_slice %21 {offsets = [0, 0], sizes = [2, 32], strides = [1, 1]} : vector<16x32xf32> to vector<2x32xf32>
    %32 = vector.extract_strided_slice %30 {offsets = [0, 0], sizes = [2, 32], strides = [1, 1]} : vector<2x64xf32> to vector<2x32xf32>
    %33 = vector.broadcast %22 : vector<1x32xf32> to vector<2x32xf32>
    %34 = arith.mulf %32, %33 : vector<2x32xf32>
    %35 = arith.addf %31, %34 : vector<2x32xf32>
    %36 = math.tanh %35 : vector<2x32xf32>
    %37 = vector.extract_strided_slice %30 {offsets = [0, 32], sizes = [2, 32], strides = [1, 1]} : vector<2x64xf32> to vector<2x32xf32>
    %cst_14 = arith.constant 1.000000e+00 : f32
    %38 = vector.broadcast %cst_14 : f32 to vector<2x32xf32>
    %39 = arith.subf %38, %37 : vector<2x32xf32>
    %40 = arith.mulf %39, %36 : vector<2x32xf32>
    %c0_15 = arith.constant 0 : index
    %c0_16 = arith.constant 0 : index
    %41 = vector.load %arg6[%c0_15, %c0_16] : memref<2x256xf32, #tpu.memory_space<vmem>>, vector<2x32xf32>
    tpu.vector_store %arg6[%c0_15, %c0_16], %40 {strides = array<i32>} : memref<2x256xf32, #tpu.memory_space<vmem>>, vector<2x32xf32>,
    %cst_17 = arith.constant dense<0.000000e+00> : vector<2x96xf32>
    %42 = tpu.matmul %40, %24, %cst_17 {dimension_numbers = #tpu.dot_dimension_numbers<[1], [0], [0], [1], [0, 0, 1, 1], [], []>} : vector<2x32xf32>, vector<32x96xf32>, vector<2x96xf32> -> vector<2x96xf32>
    %43 = vector.extract_strided_slice %20 {offsets = [2, 0], sizes = [2, 64], strides = [1, 1]} : vector<16x64xf32> to vector<2x64xf32>
    %44 = vector.extract_strided_slice %42 {offsets = [0, 0], sizes = [2, 64], strides = [1, 1]} : vector<2x96xf32> to vector<2x64xf32>
    %45 = arith.addf %43, %44 : vector<2x64xf32>
    %46 = arith.negf %45 : vector<2x64xf32>
    %47 = math.exp %46 : vector<2x64xf32>
    %cst_18 = arith.constant 1.000000e+00 : f32
    %48 = vector.broadcast %cst_18 : f32 to vector<2x64xf32>
    %49 = arith.addf %48, %47 : vector<2x64xf32>
    %50 = arith.divf %48, %49 : vector<2x64xf32>
    %51 = vector.extract_strided_slice %50 {offsets = [0, 0], sizes = [2, 32], strides = [1, 1]} : vector<2x64xf32> to vector<2x32xf32>
    %52 = vector.extract_strided_slice %50 {offsets = [0, 32], sizes = [2, 32], strides = [1, 1]} : vector<2x64xf32> to vector<2x32xf32>
    %53 = vector.extract_strided_slice %21 {offsets = [2, 0], sizes = [2, 32], strides = [1, 1]} : vector<16x32xf32> to vector<2x32xf32>
    %54 = vector.extract_strided_slice %42 {offsets = [0, 64], sizes = [2, 32], strides = [1, 1]} : vector<2x96xf32> to vector<2x32xf32>
    %55 = vector.broadcast %22 : vector<1x32xf32> to vector<2x32xf32>
    %56 = arith.addf %54, %55 : vector<2x32xf32>
    %57 = arith.mulf %51, %56 : vector<2x32xf32>
    %58 = arith.addf %53, %57 : vector<2x32xf32>
    %59 = math.tanh %58 : vector<2x32xf32>
    %cst_19 = arith.constant 1.000000e+00 : f32
    %60 = vector.broadcast %cst_19 : f32 to vector<2x32xf32>
    %61 = arith.subf %60, %52 : vector<2x32xf32>
    %62 = arith.mulf %61, %59 : vector<2x32xf32>
    %63 = arith.mulf %52, %40 : vector<2x32xf32>
    %64 = arith.addf %62, %63 : vector<2x32xf32>
    %c0_20 = arith.constant 0 : index
    %c32 = arith.constant 32 : index
    %65 = vector.load %arg6[%c0_20, %c32] : memref<2x256xf32, #tpu.memory_space<vmem>>, vector<2x32xf32>
    tpu.vector_store %arg6[%c0_20, %c32], %64 {strides = array<i32>} : memref<2x256xf32, #tpu.memory_space<vmem>>, vector<2x32xf32>,
    %cst_21 = arith.constant dense<0.000000e+00> : vector<2x96xf32>
    %66 = tpu.matmul %64, %24, %cst_21 {dimension_numbers = #tpu.dot_dimension_numbers<[1], [0], [0], [1], [0, 0, 1, 1], [], []>} : vector<2x32xf32>, vector<32x96xf32>, vector<2x96xf32> -> vector<2x96xf32>
    %67 = vector.extract_strided_slice %20 {offsets = [4, 0], sizes = [2, 64], strides = [1, 1]} : vector<16x64xf32> to vector<2x64xf32>
    %68 = vector.extract_strided_slice %66 {offsets = [0, 0], sizes = [2, 64], strides = [1, 1]} : vector<2x96xf32> to vector<2x64xf32>
    %69 = arith.addf %67, %68 : vector<2x64xf32>
    %70 = arith.negf %69 : vector<2x64xf32>
    %71 = math.exp %70 : vector<2x64xf32>
    %cst_22 = arith.constant 1.000000e+00 : f32
    %72 = vector.broadcast %cst_22 : f32 to vector<2x64xf32>
    %73 = arith.addf %72, %71 : vector<2x64xf32>
    %74 = arith.divf %72, %73 : vector<2x64xf32>
    %75 = vector.extract_strided_slice %74 {offsets = [0, 0], sizes = [2, 32], strides = [1, 1]} : vector<2x64xf32> to vector<2x32xf32>
    %76 = vector.extract_strided_slice %74 {offsets = [0, 32], sizes = [2, 32], strides = [1, 1]} : vector<2x64xf32> to vector<2x32xf32>
    %77 = vector.extract_strided_slice %21 {offsets = [4, 0], sizes = [2, 32], strides = [1, 1]} : vector<16x32xf32> to vector<2x32xf32>
    %78 = vector.extract_strided_slice %66 {offsets = [0, 64], sizes = [2, 32], strides = [1, 1]} : vector<2x96xf32> to vector<2x32xf32>
    %79 = vector.broadcast %22 : vector<1x32xf32> to vector<2x32xf32>
    %80 = arith.addf %78, %79 : vector<2x32xf32>
    %81 = arith.mulf %75, %80 : vector<2x32xf32>
    %82 = arith.addf %77, %81 : vector<2x32xf32>
    %83 = math.tanh %82 : vector<2x32xf32>
    %cst_23 = arith.constant 1.000000e+00 : f32
    %84 = vector.broadcast %cst_23 : f32 to vector<2x32xf32>
    %85 = arith.subf %84, %76 : vector<2x32xf32>
    %86 = arith.mulf %85, %83 : vector<2x32xf32>
    %87 = arith.mulf %76, %64 : vector<2x32xf32>
    %88 = arith.addf %86, %87 : vector<2x32xf32>
    %c0_24 = arith.constant 0 : index
    %c64 = arith.constant 64 : index
    %89 = vector.load %arg6[%c0_24, %c64] : memref<2x256xf32, #tpu.memory_space<vmem>>, vector<2x32xf32>
    tpu.vector_store %arg6[%c0_24, %c64], %88 {strides = array<i32>} : memref<2x256xf32, #tpu.memory_space<vmem>>, vector<2x32xf32>,
    %cst_25 = arith.constant dense<0.000000e+00> : vector<2x96xf32>
    %90 = tpu.matmul %88, %24, %cst_25 {dimension_numbers = #tpu.dot_dimension_numbers<[1], [0], [0], [1], [0, 0, 1, 1], [], []>} : vector<2x32xf32>, vector<32x96xf32>, vector<2x96xf32> -> vector<2x96xf32>
    %91 = vector.extract_strided_slice %20 {offsets = [6, 0], sizes = [2, 64], strides = [1, 1]} : vector<16x64xf32> to vector<2x64xf32>
    %92 = vector.extract_strided_slice %90 {offsets = [0, 0], sizes = [2, 64], strides = [1, 1]} : vector<2x96xf32> to vector<2x64xf32>
    %93 = arith.addf %91, %92 : vector<2x64xf32>
    %94 = arith.negf %93 : vector<2x64xf32>
    %95 = math.exp %94 : vector<2x64xf32>
    %cst_26 = arith.constant 1.000000e+00 : f32
    %96 = vector.broadcast %cst_26 : f32 to vector<2x64xf32>
    %97 = arith.addf %96, %95 : vector<2x64xf32>
    %98 = arith.divf %96, %97 : vector<2x64xf32>
    %99 = vector.extract_strided_slice %98 {offsets = [0, 0], sizes = [2, 32], strides = [1, 1]} : vector<2x64xf32> to vector<2x32xf32>
    %100 = vector.extract_strided_slice %98 {offsets = [0, 32], sizes = [2, 32], strides = [1, 1]} : vector<2x64xf32> to vector<2x32xf32>
    %101 = vector.extract_strided_slice %21 {offsets = [6, 0], sizes = [2, 32], strides = [1, 1]} : vector<16x32xf32> to vector<2x32xf32>
    %102 = vector.extract_strided_slice %90 {offsets = [0, 64], sizes = [2, 32], strides = [1, 1]} : vector<2x96xf32> to vector<2x32xf32>
    %103 = vector.broadcast %22 : vector<1x32xf32> to vector<2x32xf32>
    %104 = arith.addf %102, %103 : vector<2x32xf32>
    %105 = arith.mulf %99, %104 : vector<2x32xf32>
    %106 = arith.addf %101, %105 : vector<2x32xf32>
    %107 = math.tanh %106 : vector<2x32xf32>
    %cst_27 = arith.constant 1.000000e+00 : f32
    %108 = vector.broadcast %cst_27 : f32 to vector<2x32xf32>
    %109 = arith.subf %108, %100 : vector<2x32xf32>
    %110 = arith.mulf %109, %107 : vector<2x32xf32>
    %111 = arith.mulf %100, %88 : vector<2x32xf32>
    %112 = arith.addf %110, %111 : vector<2x32xf32>
    %c0_28 = arith.constant 0 : index
    %c96 = arith.constant 96 : index
    %113 = vector.load %arg6[%c0_28, %c96] : memref<2x256xf32, #tpu.memory_space<vmem>>, vector<2x32xf32>
    tpu.vector_store %arg6[%c0_28, %c96], %112 {strides = array<i32>} : memref<2x256xf32, #tpu.memory_space<vmem>>, vector<2x32xf32>,
    %cst_29 = arith.constant dense<0.000000e+00> : vector<2x96xf32>
    %114 = tpu.matmul %112, %24, %cst_29 {dimension_numbers = #tpu.dot_dimension_numbers<[1], [0], [0], [1], [0, 0, 1, 1], [], []>} : vector<2x32xf32>, vector<32x96xf32>, vector<2x96xf32> -> vector<2x96xf32>
    %115 = vector.extract_strided_slice %20 {offsets = [8, 0], sizes = [2, 64], strides = [1, 1]} : vector<16x64xf32> to vector<2x64xf32>
    %116 = vector.extract_strided_slice %114 {offsets = [0, 0], sizes = [2, 64], strides = [1, 1]} : vector<2x96xf32> to vector<2x64xf32>
    %117 = arith.addf %115, %116 : vector<2x64xf32>
    %118 = arith.negf %117 : vector<2x64xf32>
    %119 = math.exp %118 : vector<2x64xf32>
    %cst_30 = arith.constant 1.000000e+00 : f32
    %120 = vector.broadcast %cst_30 : f32 to vector<2x64xf32>
    %121 = arith.addf %120, %119 : vector<2x64xf32>
    %122 = arith.divf %120, %121 : vector<2x64xf32>
    %123 = vector.extract_strided_slice %122 {offsets = [0, 0], sizes = [2, 32], strides = [1, 1]} : vector<2x64xf32> to vector<2x32xf32>
    %124 = vector.extract_strided_slice %122 {offsets = [0, 32], sizes = [2, 32], strides = [1, 1]} : vector<2x64xf32> to vector<2x32xf32>
    %125 = vector.extract_strided_slice %21 {offsets = [8, 0], sizes = [2, 32], strides = [1, 1]} : vector<16x32xf32> to vector<2x32xf32>
    %126 = vector.extract_strided_slice %114 {offsets = [0, 64], sizes = [2, 32], strides = [1, 1]} : vector<2x96xf32> to vector<2x32xf32>
    %127 = vector.broadcast %22 : vector<1x32xf32> to vector<2x32xf32>
    %128 = arith.addf %126, %127 : vector<2x32xf32>
    %129 = arith.mulf %123, %128 : vector<2x32xf32>
    %130 = arith.addf %125, %129 : vector<2x32xf32>
    %131 = math.tanh %130 : vector<2x32xf32>
    %cst_31 = arith.constant 1.000000e+00 : f32
    %132 = vector.broadcast %cst_31 : f32 to vector<2x32xf32>
    %133 = arith.subf %132, %124 : vector<2x32xf32>
    %134 = arith.mulf %133, %131 : vector<2x32xf32>
    %135 = arith.mulf %124, %112 : vector<2x32xf32>
    %136 = arith.addf %134, %135 : vector<2x32xf32>
    %c0_32 = arith.constant 0 : index
    %c128 = arith.constant 128 : index
    %137 = vector.load %arg6[%c0_32, %c128] : memref<2x256xf32, #tpu.memory_space<vmem>>, vector<2x32xf32>
    tpu.vector_store %arg6[%c0_32, %c128], %136 {strides = array<i32>} : memref<2x256xf32, #tpu.memory_space<vmem>>, vector<2x32xf32>,
    %cst_33 = arith.constant dense<0.000000e+00> : vector<2x96xf32>
    %138 = tpu.matmul %136, %24, %cst_33 {dimension_numbers = #tpu.dot_dimension_numbers<[1], [0], [0], [1], [0, 0, 1, 1], [], []>} : vector<2x32xf32>, vector<32x96xf32>, vector<2x96xf32> -> vector<2x96xf32>
    %139 = vector.extract_strided_slice %20 {offsets = [10, 0], sizes = [2, 64], strides = [1, 1]} : vector<16x64xf32> to vector<2x64xf32>
    %140 = vector.extract_strided_slice %138 {offsets = [0, 0], sizes = [2, 64], strides = [1, 1]} : vector<2x96xf32> to vector<2x64xf32>
    %141 = arith.addf %139, %140 : vector<2x64xf32>
    %142 = arith.negf %141 : vector<2x64xf32>
    %143 = math.exp %142 : vector<2x64xf32>
    %cst_34 = arith.constant 1.000000e+00 : f32
    %144 = vector.broadcast %cst_34 : f32 to vector<2x64xf32>
    %145 = arith.addf %144, %143 : vector<2x64xf32>
    %146 = arith.divf %144, %145 : vector<2x64xf32>
    %147 = vector.extract_strided_slice %146 {offsets = [0, 0], sizes = [2, 32], strides = [1, 1]} : vector<2x64xf32> to vector<2x32xf32>
    %148 = vector.extract_strided_slice %146 {offsets = [0, 32], sizes = [2, 32], strides = [1, 1]} : vector<2x64xf32> to vector<2x32xf32>
    %149 = vector.extract_strided_slice %21 {offsets = [10, 0], sizes = [2, 32], strides = [1, 1]} : vector<16x32xf32> to vector<2x32xf32>
    %150 = vector.extract_strided_slice %138 {offsets = [0, 64], sizes = [2, 32], strides = [1, 1]} : vector<2x96xf32> to vector<2x32xf32>
    %151 = vector.broadcast %22 : vector<1x32xf32> to vector<2x32xf32>
    %152 = arith.addf %150, %151 : vector<2x32xf32>
    %153 = arith.mulf %147, %152 : vector<2x32xf32>
    %154 = arith.addf %149, %153 : vector<2x32xf32>
    %155 = math.tanh %154 : vector<2x32xf32>
    %cst_35 = arith.constant 1.000000e+00 : f32
    %156 = vector.broadcast %cst_35 : f32 to vector<2x32xf32>
    %157 = arith.subf %156, %148 : vector<2x32xf32>
    %158 = arith.mulf %157, %155 : vector<2x32xf32>
    %159 = arith.mulf %148, %136 : vector<2x32xf32>
    %160 = arith.addf %158, %159 : vector<2x32xf32>
    %c0_36 = arith.constant 0 : index
    %c160 = arith.constant 160 : index
    %161 = vector.load %arg6[%c0_36, %c160] : memref<2x256xf32, #tpu.memory_space<vmem>>, vector<2x32xf32>
    tpu.vector_store %arg6[%c0_36, %c160], %160 {strides = array<i32>} : memref<2x256xf32, #tpu.memory_space<vmem>>, vector<2x32xf32>,
    %cst_37 = arith.constant dense<0.000000e+00> : vector<2x96xf32>
    %162 = tpu.matmul %160, %24, %cst_37 {dimension_numbers = #tpu.dot_dimension_numbers<[1], [0], [0], [1], [0, 0, 1, 1], [], []>} : vector<2x32xf32>, vector<32x96xf32>, vector<2x96xf32> -> vector<2x96xf32>
    %163 = vector.extract_strided_slice %20 {offsets = [12, 0], sizes = [2, 64], strides = [1, 1]} : vector<16x64xf32> to vector<2x64xf32>
    %164 = vector.extract_strided_slice %162 {offsets = [0, 0], sizes = [2, 64], strides = [1, 1]} : vector<2x96xf32> to vector<2x64xf32>
    %165 = arith.addf %163, %164 : vector<2x64xf32>
    %166 = arith.negf %165 : vector<2x64xf32>
    %167 = math.exp %166 : vector<2x64xf32>
    %cst_38 = arith.constant 1.000000e+00 : f32
    %168 = vector.broadcast %cst_38 : f32 to vector<2x64xf32>
    %169 = arith.addf %168, %167 : vector<2x64xf32>
    %170 = arith.divf %168, %169 : vector<2x64xf32>
    %171 = vector.extract_strided_slice %170 {offsets = [0, 0], sizes = [2, 32], strides = [1, 1]} : vector<2x64xf32> to vector<2x32xf32>
    %172 = vector.extract_strided_slice %170 {offsets = [0, 32], sizes = [2, 32], strides = [1, 1]} : vector<2x64xf32> to vector<2x32xf32>
    %173 = vector.extract_strided_slice %21 {offsets = [12, 0], sizes = [2, 32], strides = [1, 1]} : vector<16x32xf32> to vector<2x32xf32>
    %174 = vector.extract_strided_slice %162 {offsets = [0, 64], sizes = [2, 32], strides = [1, 1]} : vector<2x96xf32> to vector<2x32xf32>
    %175 = vector.broadcast %22 : vector<1x32xf32> to vector<2x32xf32>
    %176 = arith.addf %174, %175 : vector<2x32xf32>
    %177 = arith.mulf %171, %176 : vector<2x32xf32>
    %178 = arith.addf %173, %177 : vector<2x32xf32>
    %179 = math.tanh %178 : vector<2x32xf32>
    %cst_39 = arith.constant 1.000000e+00 : f32
    %180 = vector.broadcast %cst_39 : f32 to vector<2x32xf32>
    %181 = arith.subf %180, %172 : vector<2x32xf32>
    %182 = arith.mulf %181, %179 : vector<2x32xf32>
    %183 = arith.mulf %172, %160 : vector<2x32xf32>
    %184 = arith.addf %182, %183 : vector<2x32xf32>
    %c0_40 = arith.constant 0 : index
    %c192 = arith.constant 192 : index
    %185 = vector.load %arg6[%c0_40, %c192] : memref<2x256xf32, #tpu.memory_space<vmem>>, vector<2x32xf32>
    tpu.vector_store %arg6[%c0_40, %c192], %184 {strides = array<i32>} : memref<2x256xf32, #tpu.memory_space<vmem>>, vector<2x32xf32>,
    %cst_41 = arith.constant dense<0.000000e+00> : vector<2x96xf32>
    %186 = tpu.matmul %184, %24, %cst_41 {dimension_numbers = #tpu.dot_dimension_numbers<[1], [0], [0], [1], [0, 0, 1, 1], [], []>} : vector<2x32xf32>, vector<32x96xf32>, vector<2x96xf32> -> vector<2x96xf32>
    %187 = vector.extract_strided_slice %20 {offsets = [14, 0], sizes = [2, 64], strides = [1, 1]} : vector<16x64xf32> to vector<2x64xf32>
    %188 = vector.extract_strided_slice %186 {offsets = [0, 0], sizes = [2, 64], strides = [1, 1]} : vector<2x96xf32> to vector<2x64xf32>
    %189 = arith.addf %187, %188 : vector<2x64xf32>
    %190 = arith.negf %189 : vector<2x64xf32>
    %191 = math.exp %190 : vector<2x64xf32>
    %cst_42 = arith.constant 1.000000e+00 : f32
    %192 = vector.broadcast %cst_42 : f32 to vector<2x64xf32>
    %193 = arith.addf %192, %191 : vector<2x64xf32>
    %194 = arith.divf %192, %193 : vector<2x64xf32>
    %195 = vector.extract_strided_slice %194 {offsets = [0, 0], sizes = [2, 32], strides = [1, 1]} : vector<2x64xf32> to vector<2x32xf32>
    %196 = vector.extract_strided_slice %194 {offsets = [0, 32], sizes = [2, 32], strides = [1, 1]} : vector<2x64xf32> to vector<2x32xf32>
    %197 = vector.extract_strided_slice %21 {offsets = [14, 0], sizes = [2, 32], strides = [1, 1]} : vector<16x32xf32> to vector<2x32xf32>
    %198 = vector.extract_strided_slice %186 {offsets = [0, 64], sizes = [2, 32], strides = [1, 1]} : vector<2x96xf32> to vector<2x32xf32>
    %199 = vector.broadcast %22 : vector<1x32xf32> to vector<2x32xf32>
    %200 = arith.addf %198, %199 : vector<2x32xf32>
    %201 = arith.mulf %195, %200 : vector<2x32xf32>
    %202 = arith.addf %197, %201 : vector<2x32xf32>
    %203 = math.tanh %202 : vector<2x32xf32>
    %cst_43 = arith.constant 1.000000e+00 : f32
    %204 = vector.broadcast %cst_43 : f32 to vector<2x32xf32>
    %205 = arith.subf %204, %196 : vector<2x32xf32>
    %206 = arith.mulf %205, %203 : vector<2x32xf32>
    %207 = arith.mulf %196, %184 : vector<2x32xf32>
    %208 = arith.addf %206, %207 : vector<2x32xf32>
    %c0_44 = arith.constant 0 : index
    %c224 = arith.constant 224 : index
    %209 = vector.load %arg6[%c0_44, %c224] : memref<2x256xf32, #tpu.memory_space<vmem>>, vector<2x32xf32>
    tpu.vector_store %arg6[%c0_44, %c224], %208 {strides = array<i32>} : memref<2x256xf32, #tpu.memory_space<vmem>>, vector<2x32xf32>,
    return
  }
}

</mosaic_0001>

<bundles_post_ra>
// kernel: encoder_forward.1
= control target key start
LH: loop header
LB: loop body
LE: loop exit
PB: predicated region body
PF: predicated region fallthrough
CT: control target
= control target key end

     0   :  { %v1924_v0 = vmov 0   ;;  %vm52_vm0 = vcmask 1043456   ;;  %vm150_vm1 = vcmask 261120   ;;  %v25_v29 = vlaneseq  ;;  %s1926_s30 = smov 64   ;;  %s1929_s13 = smov 96   ;;  %s2439_s0 = inlined_call_operand.vmem [shape: s32[16,1], index: 0, kind: input, shape index: {}]   ;;  %s2440_s1 = inlined_call_operand.vmem [shape: f32[20,32], index: 1, kind: input, shape index: {}]   ;;  %s2441_s2 = inlined_call_operand.vmem [shape: f32[96,32], index: 2, kind: input, shape index: {}]   ;;  %s2442_s5 = inlined_call_operand.vmem [shape: f32[1,96], index: 5, kind: input, shape index: {}]   ;;  %s2443_s4 = inlined_call_operand.vmem [shape: f32[1,96], index: 4, kind: input, shape index: {}]   ;;  %s2444_s3 = inlined_call_operand.vmem [shape: f32[96,32], index: 3, kind: input, shape index: {}]   ;;  %s2445_s6 = inlined_call_operand.vmem [shape: f32[2,256], index: 6, kind: output, shape index: {}]  }
   0x1   :  { %1875 = vset.pattern.permute.xlu0 %v1924_v0  ;;  %v23_v1 = vld [vmem:[%s2439_s0] sm:$0xff]  ;;  %v40_v3 = vld [vmem:[%s2440_s1 + $0x8] sm:$0xff]  ;;  %v41_v7 = vld [vmem:[%s2440_s1 + $0x10] sm:$0xf]  ;;  %vm45_vm3 = vcmask 162816   ;;  %v1925_v32 = vmov 0.0  }
   0x2   :  { %v39_v2 = vld [vmem:[%s2440_s1] sm:$0xff]  ;;  %28 = vperm.xlu0 %1875, %v23_v1   ;;  %v24_v5 = vld [vmem:[%s2439_s0 + $0x8] sm:$0xff]  ;;  %v43_v6 = vmax.f32 %v40_v3, 0.0  ;;  %v44_v9 = vmax.f32 %v41_v7, 0.0  ;;  %vm1990_vm2 = vmpackc.low %vm150_vm1, %vm150_vm1  ;;  %v26_v30 = vand.u32 127, %v25_v29  ;;  %v1927_v53 = vmov 0.0|0.0  }
   0x3   :  { %v42_v4 = vmax.f32 %v39_v2, 0.0  ;;  %v131_v10 = vld [vmem:[%s2441_s2] sm:$0xff]  ;;  %v132_v11 = vld [vmem:[%s2441_s2 + $0x8] sm:$0xff]  ;;  %v133_v14 = vld [vmem:[%s2441_s2 + $0x10] sm:$0xff]  ;;  %vm1928_vm6 = vmmov 0   ;;  %vm322_vm7 = vcmask 254976  }
   0x4   :  { %v1663_v13 = vpack.c.bf16 %v132_v11, %v131_v10  ;;  %v134_v15 = vld [vmem:[%s2441_s2 + $0x18] sm:$0xff]  ;;  %v135_v17 = vld [vmem:[%s2441_s2 + $0x20] sm:$0xff]  ;;  %v136_v18 = vld [vmem:[%s2441_s2 + $0x28] sm:$0xff]  ;;  %vm477_vm8 = vcmask 517376   ;;  %vm599_vm9 = vcmask 779776   ;;  %vm722_vm10 = vcmask 1042176  }
   0x5   :  { %v1659_v8 = vpack.c.bf16 %v43_v6, %v42_v4  ;;  %v1669_v16 = vpack.c.bf16 %v134_v15, %v133_v14  ;;  %v1675_v19 = vpack.c.bf16 %v136_v18, %v135_v17  ;;  %v137_v20 = vld [vmem:[%s2441_s2 + $0x30] sm:$0xff]  ;;  %v138_v21 = vld [vmem:[%s2441_s2 + $0x38] sm:$0xff]  ;;  %v139_v23 = vld [vmem:[%s2441_s2 + $0x40] sm:$0xff] }
   0x6   :  { %31 = vperm.xlu0 %1875, %v24_v5   ;;  %1665 = vmatprep.subr.msk.bf16.mxu1 %vm1990_vm2, %v1663_v13  ;;  %v1681_v22 = vpack.c.bf16 %v138_v21, %v137_v20  ;;  %v140_v24 = vld [vmem:[%s2441_s2 + $0x48] sm:$0xff]  ;;  %v141_v26 = vld [vmem:[%s2441_s2 + $0x50] sm:$0xff]  ;;  %v142_v27 = vld [vmem:[%s2441_s2 + $0x58] sm:$0xff] }
   0x7   :  { %1660 = vmatprep.subr.bf16.mxu0 %v1659_v8  ;;  %1668 = vmatpush3.bf16.xpose.msk.msra.mxu1 %vm1990_vm2, %v1663_v13  ;;  %v1687_v25 = vpack.c.bf16 %v140_v24, %v139_v23  ;;  %v1693_v28 = vpack.c.bf16 %v142_v27, %v141_v26  ;;  %v2054_v36 = vld [vmem:[%s2442_s5] ss:$0 sm:$0xff]  ;;  %v278_v55 = vld [vmem:[%s2444_s3 + $0x8] sm:$0xff]  ;;  %v279_v57 = vld [vmem:[%s2444_s3 + $0x10] sm:$0xff] }
   0x8   :  { %1662 = vmatpush3.bf16.msra.mxu0 %v1659_v8  ;;  %1671 = vmatprep.subr.msk.bf16.mxu1 %vm1990_vm2, %v1669_v16  ;;  %v1209_v39 = vld [vmem:[%s2443_s4] ss:$0 sm:$0xff]  ;;  %v280_v58 = vld [vmem:[%s2444_s3 + $0x18] sm:$0xff]  ;;  %v282_v62 = vld [vmem:[%s2444_s3 + $0x28] sm:$0xff] }
   0x9   :  { %1438 = vmatprep.subr.msk.mxu0 %vm52_vm0, %v44_v9  ;;  %295 = vrot.lane.b32.xlu1 %v2054_v36, %s1926_s30  ;;  %v277_v54 = vld [vmem:[%s2444_s3] sm:$0xff]  ;;  %v2102_v59 = vpack.c.bf16 %v280_v58, %v279_v57  ;;  %v283_v0 = vld [vmem:[%s2444_s3 + $0x30] sm:$0xff]  ;;  %v284_v1 = vld [vmem:[%s2444_s3 + $0x38] sm:$0xff] }
   0xa   :  { %v2083_v56 = vpack.c.bf16 %v278_v55, %v277_v54  ;;  %v281_v61 = vld [vmem:[%s2444_s3 + $0x20] sm:$0xff]  ;;  %v2135_v2 = vpack.c.bf16 %v284_v1, %v283_v0  ;;  %v286_v4 = vld [vmem:[%s2444_s3 + $0x48] sm:$0xff]  ;;  %v287_v6 = vld [vmem:[%s2444_s3 + $0x50] sm:$0xff] }
   0xb   :  { %v2119_v63 = vpack.c.bf16 %v282_v62, %v281_v61  ;;  %v285_v3 = vld [vmem:[%s2444_s3 + $0x40] sm:$0xff]  ;;  %v288_v7 = vld [vmem:[%s2444_s3 + $0x58] sm:$0xff]  ;;  %s1931_s3 = smov 32  }
   0xc   :  { %1439 = vmatpush3.msk.msra.mxu0 %vm52_vm0, %v44_v9  ;;  %v2151_v5 = vpack.c.bf16 %v286_v4, %v285_v3  ;;  %v2167_v8 = vpack.c.bf16 %v288_v7, %v287_v6 }
   0xd   :  { %1699 = vmatprep.subr.bf16.mxu0 %v1927_v53 }
   0xf   :  { %1674 = vmatpush3.bf16.xpose.msk.msra.mxu1 %vm1990_vm2, %v1669_v16 }
  0x10   :  { %1677 = vmatprep.subr.msk.bf16.mxu1 %vm1990_vm2, %v1675_v19 }
  0x17   :  { %1680 = vmatpush3.bf16.xpose.msk.msra.mxu1 %vm1990_vm2, %v1675_v19 }
  0x18   :  { %1683 = vmatprep.subr.msk.bf16.mxu1 %vm1990_vm2, %v1681_v22 }
  0x1f   :  { %1686 = vmatpush3.bf16.xpose.msk.msra.mxu1 %vm1990_vm2, %v1681_v22 }
  0x20   :  { %1689 = vmatprep.subr.msk.bf16.mxu1 %vm1990_vm2, %v1687_v25 }
  0x27   :  { %1692 = vmatpush3.bf16.xpose.msk.msra.mxu1 %vm1990_vm2, %v1687_v25 }
  0x28   :  { %1695 = vmatprep.subr.msk.bf16.mxu1 %vm1990_vm2, %v1693_v28 }
  0x2f   :  { %1698 = vmatpush3.bf16.xpose.msk.msra.mxu1 %vm1990_vm2, %v1693_v28 }
  0x30   :  { %1723 = vmatprep.subr.bf16.mxu1 %v1927_v53 }
  0x7b   :  { %v296_v48 = vpop.permute.xlu1 %295 }
  0x81   :  { %v29_v31 = vpop.permute.xlu0 %28 }
  0x82   :  { %vm33_vm4 = vcmp.eq.s32.totalorder %v29_v31, %v26_v30 }
  0x83   :  { %v1204_v33 = vsel %vm33_vm4, 1.0, %v1925_v32 }
  0x84   :  { %1440 = vmatprep.mubr.msk.f32.mxu0 %vm45_vm3, %v1204_v33 }
  0x85   :  { %v32_v34 = vpop.permute.xlu0 %31 }
  0x86   :  { %vm34_vm5 = vcmp.eq.s32.totalorder %v32_v34, %v26_v30 }
  0x87   :  { %v1205_v35 = vsel %vm34_vm5, 1.0, %v1925_v32 }
  0x88   :  { %1441 = vmatmul.mubr.msk.f32.vlgmr.msra.gmra.mrb[0].mxu0 %vm45_vm3, %v1205_v35 }
  0x89   :  { %1494 = vmatprep.mubr.msk.f32.mxu0 %vm1928_vm6, %v1925_v32  ;;  %1702 = vmatpush3.bf16.xpose.msk.msra.mxu0 %vm1990_vm2, %v2083_v56 }
  0x8a   :  { %1703 = vmatprep.subr.bf16.mxu0 %v1927_v53 }
  0x91   :  { %1706 = vmatpush3.bf16.xpose.msk.msra.mxu0 %vm1990_vm2, %v2102_v59 }
  0x92   :  { %1707 = vmatprep.subr.bf16.mxu0 %v1927_v53 }
  0x99   :  { %1710 = vmatpush3.bf16.xpose.msk.msra.mxu0 %vm1990_vm2, %v2119_v63 }
  0x9a   :  { %1711 = vmatprep.subr.bf16.mxu0 %v1927_v53 }
  0xa1   :  { %1714 = vmatpush3.bf16.xpose.msk.msra.mxu0 %vm1990_vm2, %v2135_v2 }
  0xa2   :  { %1715 = vmatprep.subr.bf16.mxu0 %v1927_v53 }
  0xa9   :  { %1718 = vmatpush3.bf16.xpose.msk.msra.mxu0 %vm1990_vm2, %v2151_v5 }
  0xaa   :  { %1719 = vmatprep.subr.bf16.mxu0 %v1927_v53 }
  0xb1   :  { %1722 = vmatpush3.bf16.xpose.msk.msra.mxu0 %vm1990_vm2, %v2167_v8 }
  0xb2   :  { %1747 = vmatprep.subr.bf16.mxu0 %v1927_v53 }
 0x15b   :  { %v1442_v37 = vpop.f32.mrb[0].mxu0 }
 0x15c   :  { %v122_v38 = vpop.f32.mrb[1].mxu0 }
 0x15d   :  { %1467 = vmatprep.mubr.msk.f32.mxu1 %vm150_vm1, %v122_v38 }
 0x15e   :  { %1468 = vmatmul.mubr.msk.f32.vlgmr.msra.gmra.mrb[0].mxu1 %vm150_vm1, %v1442_v37 }
 0x15f   :  { %1521 = vmatprep.mubr.msk.f32.mxu1 %vm1928_vm6, %v1925_v32  ;;  %1726 = vmatpush3.bf16.xpose.msk.msra.mxu1 %vm1990_vm2, %v2083_v56 }
 0x160   :  { %1727 = vmatprep.subr.bf16.mxu1 %v1927_v53 }
 0x167   :  { %1730 = vmatpush3.bf16.xpose.msk.msra.mxu1 %vm1990_vm2, %v2102_v59 }
 0x168   :  { %1731 = vmatprep.subr.bf16.mxu1 %v1927_v53 }
 0x16f   :  { %1734 = vmatpush3.bf16.xpose.msk.msra.mxu1 %vm1990_vm2, %v2119_v63 }
 0x170   :  { %1735 = vmatprep.subr.bf16.mxu1 %v1927_v53 }
 0x177   :  { %1738 = vmatpush3.bf16.xpose.msk.msra.mxu1 %vm1990_vm2, %v2135_v2 }
 0x178   :  { %1739 = vmatprep.subr.bf16.mxu1 %v1927_v53 }
 0x17f   :  { %1742 = vmatpush3.bf16.xpose.msk.msra.mxu1 %vm1990_vm2, %v2151_v5 }
 0x180   :  { %1743 = vmatprep.subr.bf16.mxu1 %v1927_v53 }
 0x187   :  { %1746 = vmatpush3.bf16.xpose.msk.msra.mxu1 %vm1990_vm2, %v2167_v8 }
 0x188   :  { %1771 = vmatprep.subr.bf16.mxu1 %v1927_v53 }
 0x231   :  { %v1469_v40 = vpop.f32.mrb[0].mxu1 }
 0x232   :  { %v2063_v41 = vadd.f32 %v1469_v40, %v1209_v39  ;;  %v259_v42 = vpop.f32.mrb[1].mxu1 }
 0x233   :  { %v2065_v43 = vadd.f32 %v1209_v39, %v259_v42 }
 0x235   :  { %v2069_v44 = vadd.f32 %v2054_v36, %v2065_v43 }
 0x237   :  { %v1225_v45 = vmul.f32 -1.442695, %v2069_v44 }
 0x239   :  { %1876 = vpow2.f32 %v1225_v45 }
 0x243   :  { %v1877_v46 = vpop.eup %1876 }
 0x244   :  { %v292_v47 = vadd.f32 1.0, %v1877_v46 }
 0x246   :  { %1878 = vrcp.f32 %v292_v47 }
 0x250   :  { %v1879_v49 = vpop.eup %1878 }
 0x251   :  { %v298_v50 = vmul.f32 %v1879_v49, %v296_v48  ;;  %v305_v9 = vsub.f32 1.0, %v1879_v49 }
 0x253   :  { %300 = vrot.lane.b32.xlu1 %v298_v50, %s1926_s30 }
 0x2c5   :  { %v301_v51 = vpop.permute.xlu1 %300 }
 0x2c6   :  { %v303_v52 = vadd.f32 %v301_v51, %v2065_v43 }
 0x2c8   :  { %1880 = vtanh.f32 %v303_v52 }
 0x2d2   :  { %v1881_v60 = vpop.eup %1880 }
 0x2d3   :  { %307 = vrot.lane.b32.xlu0 %v1881_v60, %s1929_s13 }
 0x345   :  { %v308_v10 = vpop.permute.xlu0 %307 }
 0x346   :  { %v2177_v11 = vmul.f32 %v308_v10, %v305_v9 }
 0x348   :  { %324 = vrot.lane.b32.xlu1 %v2177_v11, %s1929_s13  ;;  %v463_v30 = vrot.slane %v2177_v11, 6 }
 0x3ba   :  { %v325_v13 = vpop.permute.xlu1 %324 }
 0x3bb   :  { %1495 = vmatmul.mubr.msk.f32.vlgmr.msra.gmra.mrb[2].mxu0 %vm150_vm1, %v325_v13 }
 0x3bc   :  { %1750 = vmatpush3.bf16.xpose.msk.msra.mxu0 %vm1990_vm2, %v2083_v56  ;;  %1548 = vmatprep.mubr.msk.f32.mxu0 %vm1928_vm6, %v1925_v32 }
 0x3bd   :  { %1751 = vmatprep.subr.bf16.mxu0 %v1927_v53 }
 0x3c4   :  { %1754 = vmatpush3.bf16.xpose.msk.msra.mxu0 %vm1990_vm2, %v2102_v59 }
 0x3c5   :  { %1755 = vmatprep.subr.bf16.mxu0 %v1927_v53 }
 0x3cc   :  { %1758 = vmatpush3.bf16.xpose.msk.msra.mxu0 %vm1990_vm2, %v2119_v63 }
 0x3cd   :  { %1759 = vmatprep.subr.bf16.mxu0 %v1927_v53 }
 0x3d4   :  { %1762 = vmatpush3.bf16.xpose.msk.msra.mxu0 %vm1990_vm2, %v2135_v2 }
 0x3d5   :  { %1763 = vmatprep.subr.bf16.mxu0 %v1927_v53 }
 0x3dc   :  { %1766 = vmatpush3.bf16.xpose.msk.msra.mxu0 %vm1990_vm2, %v2151_v5 }
 0x3dd   :  { %1767 = vmatprep.subr.bf16.mxu0 %v1927_v53 }
 0x3e4   :  { %1770 = vmatpush3.bf16.xpose.msk.msra.mxu0 %vm1990_vm2, %v2167_v8 }
 0x3e5   :  { %1795 = vmatprep.subr.bf16.mxu0 %v1927_v53 }
 0x48e   :  { %v430_v14 = vpop.f32.mrb[2].mxu0 }
 0x48f   :  { %v444_v15 = vadd.f32 %v2054_v36, %v430_v14  ;;  %v1496_v16 = vpop.f32.mrb[3].mxu0  ;;  %v435_v18 = vrot.slane %v430_v14, 6 }
 0x491   :  { %v446_v17 = vrot.slane %v444_v15, 6  ;;  %v437_v19 = vadd.f32 %v435_v18, %v2069_v44 }
 0x493   :  { %447 = vrot.lane.b32.xlu0 %v446_v17, %s1926_s30  ;;  %v1239_v20 = vmul.f32 -1.442695, %v437_v19 }
 0x495   :  { %1882 = vpow2.f32 %v1239_v20 }
 0x49f   :  { %v1883_v21 = vpop.eup %1882 }
 0x4a0   :  { %v441_v22 = vadd.f32 1.0, %v1883_v21 }
 0x4a2   :  { %1884 = vrcp.f32 %v441_v22 }
 0x4ac   :  { %v1885_v23 = vpop.eup %1884 }
 0x4ad   :  { %v457_v31 = vsub.f32 1.0, %v1885_v23  ;;  %v465_v35 = vmul.f32 %v1885_v23, %v463_v30 }
 0x505   :  { %v448_v24 = vpop.permute.xlu0 %447 }
 0x506   :  { %v450_v25 = vmul.f32 %v1885_v23, %v448_v24 }
 0x508   :  { %452 = vrot.lane.b32.xlu1 %v450_v25, %s1926_s30 }
 0x57a   :  { %v453_v26 = vpop.permute.xlu1 %452 }
 0x57b   :  { %v455_v27 = vadd.f32 %v453_v26, %v2065_v43 }
 0x57d   :  { %1886 = vtanh.f32 %v455_v27 }
 0x587   :  { %v1887_v28 = vpop.eup %1886 }
 0x588   :  { %459 = vrot.lane.b32.xlu0 %v1887_v28, %s1929_s13 }
 0x5fa   :  { %v460_v33 = vpop.permute.xlu0 %459 }
 0x5fb   :  { %v462_v34 = vmul.f32 %v460_v33, %v457_v31 }
 0x5fd   :  { %v2215_v37 = vadd.f32 %v465_v35, %v462_v34 }
 0x5ff   :  { %v479_v38 = vrot.slane %v2215_v37, 2  ;;  %v583_v62 = vrot.slane %v2215_v37, 6 }
 0x601   :  { %480 = vrot.lane.b32.xlu1 %v479_v38, %s1929_s13 }
 0x673   :  { %v481_v39 = vpop.permute.xlu1 %480 }
 0x674   :  { %1522 = vmatmul.mubr.msk.f32.vlgmr.msra.gmra.mrb[2].mxu1 %vm150_vm1, %v481_v39  ;;  %v2325_v39 = vadd.f32 %v2054_v36, %v2063_v41 }
 0x675   :  { %1774 = vmatpush3.bf16.xpose.msk.msra.mxu1 %vm1990_vm2, %v2083_v56  ;;  %1575 = vmatprep.mubr.msk.f32.mxu1 %vm1928_vm6, %v1925_v32 }
 0x676   :  { %1775 = vmatprep.subr.bf16.mxu1 %v1927_v53 }
 0x67d   :  { %1778 = vmatpush3.bf16.xpose.msk.msra.mxu1 %vm1990_vm2, %v2102_v59 }
 0x67e   :  { %1779 = vmatprep.subr.bf16.mxu1 %v1927_v53 }
 0x685   :  { %1782 = vmatpush3.bf16.xpose.msk.msra.mxu1 %vm1990_vm2, %v2119_v63 }
 0x686   :  { %1783 = vmatprep.subr.bf16.mxu1 %v1927_v53 }
 0x68d   :  { %1786 = vmatpush3.bf16.xpose.msk.msra.mxu1 %vm1990_vm2, %v2135_v2 }
 0x68e   :  { %1787 = vmatprep.subr.bf16.mxu1 %v1927_v53 }
 0x695   :  { %1790 = vmatpush3.bf16.xpose.msk.msra.mxu1 %vm1990_vm2, %v2151_v5 }
 0x696   :  { %1791 = vmatprep.subr.bf16.mxu1 %v1927_v53 }
 0x69d   :  { %1794 = vmatpush3.bf16.xpose.msk.msra.mxu1 %vm1990_vm2, %v2167_v8 }
 0x69e   :  { %1819 = vmatprep.subr.bf16.mxu1 %v1927_v53 }
 0x747   :  { %v550_v40 = vpop.f32.mrb[2].mxu1 }
 0x748   :  { %v564_v42 = vadd.f32 %v2054_v36, %v550_v40  ;;  %v1523_v45 = vpop.f32.mrb[3].mxu1  ;;  %v555_v47 = vrot.slane %v550_v40, 4 }
 0x74a   :  { %v566_v46 = vrot.slane %v564_v42, 4  ;;  %v557_v48 = vadd.f32 %v555_v47, %v2069_v44 }
 0x74c   :  { %567 = vrot.lane.b32.xlu0 %v566_v46, %s1926_s30  ;;  %v1253_v49 = vmul.f32 -1.442695, %v557_v48 }
 0x74e   :  { %1888 = vpow2.f32 %v1253_v49 }
 0x758   :  { %v1889_v50 = vpop.eup %1888 }
 0x759   :  { %v561_v51 = vadd.f32 1.0, %v1889_v50 }
 0x75b   :  { %1890 = vrcp.f32 %v561_v51 }
 0x765   :  { %v1891_v52 = vpop.eup %1890 }
 0x766   :  { %v577_v61 = vsub.f32 1.0, %v1891_v52  ;;  %v585_v1 = vmul.f32 %v1891_v52, %v583_v62 }
 0x7be   :  { %v568_v54 = vpop.permute.xlu0 %567 }
 0x7bf   :  { %v570_v55 = vmul.f32 %v1891_v52, %v568_v54 }
 0x7c1   :  { %572 = vrot.lane.b32.xlu1 %v570_v55, %s1926_s30 }
 0x833   :  { %v573_v57 = vpop.permute.xlu1 %572 }
 0x834   :  { %v575_v58 = vadd.f32 %v573_v57, %v2065_v43 }
 0x836   :  { %1892 = vtanh.f32 %v575_v58 }
 0x840   :  { %v1893_v60 = vpop.eup %1892 }
 0x841   :  { %579 = vrot.lane.b32.xlu0 %v1893_v60, %s1929_s13 }
 0x8b3   :  { %v580_v0 = vpop.permute.xlu0 %579 }
 0x8b4   :  { %v582_v3 = vmul.f32 %v580_v0, %v577_v61 }
 0x8b6   :  { %v2253_v4 = vadd.f32 %v585_v1, %v582_v3 }
 0x8b8   :  { %v601_v6 = vrot.slane %v2253_v4, 4 }
 0x8ba   :  { %602 = vrot.lane.b32.xlu1 %v601_v6, %s1929_s13 }
 0x92c   :  { %v603_v7 = vpop.permute.xlu1 %602 }
 0x92d   :  { %1549 = vmatmul.mubr.msk.f32.vlgmr.msra.gmra.mrb[4].mxu0 %vm150_vm1, %v603_v7 }
 0x92e   :  { %1798 = vmatpush3.bf16.xpose.msk.msra.mxu0 %vm1990_vm2, %v2083_v56  ;;  %1602 = vmatprep.mubr.msk.f32.mxu0 %vm1928_vm6, %v1925_v32 }
 0x92f   :  { %1799 = vmatprep.subr.bf16.mxu0 %v1927_v53 }
 0x936   :  { %1802 = vmatpush3.bf16.xpose.msk.msra.mxu0 %vm1990_vm2, %v2102_v59 }
 0x937   :  { %1803 = vmatprep.subr.bf16.mxu0 %v1927_v53 }
 0x93e   :  { %1806 = vmatpush3.bf16.xpose.msk.msra.mxu0 %vm1990_vm2, %v2119_v63 }
 0x93f   :  { %1807 = vmatprep.subr.bf16.mxu0 %v1927_v53 }
 0x946   :  { %1810 = vmatpush3.bf16.xpose.msk.msra.mxu0 %vm1990_vm2, %v2135_v2 }
 0x947   :  { %1811 = vmatprep.subr.bf16.mxu0 %v1927_v53 }
 0x94e   :  { %1814 = vmatpush3.bf16.xpose.msk.msra.mxu0 %vm1990_vm2, %v2151_v5 }
 0x94f   :  { %1815 = vmatprep.subr.bf16.mxu0 %v1927_v53 }
 0x956   :  { %1818 = vmatpush3.bf16.xpose.msk.msra.mxu0 %vm1990_vm2, %v2167_v8 }
 0x957   :  { %1843 = vmatprep.subr.bf16.mxu0 %v1927_v53 }
 0xa00   :  { %v672_v9 = vpop.f32.mrb[4].mxu0 }
 0xa01   :  { %v686_v10 = vadd.f32 %v2054_v36, %v672_v9  ;;  %v1550_v13 = vpop.f32.mrb[5].mxu0  ;;  %v677_v15 = vrot.slane %v672_v9, 2 }
 0xa03   :  { %v688_v14 = vrot.slane %v686_v10, 2  ;;  %v679_v16 = vadd.f32 %v677_v15, %v2069_v44  ;;  %v705_v44 = vrot.slane %v2253_v4, 6 }
 0xa05   :  { %689 = vrot.lane.b32.xlu0 %v688_v14, %s1926_s30  ;;  %v1267_v17 = vmul.f32 -1.442695, %v679_v16 }
 0xa07   :  { %1894 = vpow2.f32 %v1267_v17 }
 0xa11   :  { %v1895_v18 = vpop.eup %1894 }
 0xa12   :  { %v683_v19 = vadd.f32 1.0, %v1895_v18 }
 0xa14   :  { %1896 = vrcp.f32 %v683_v19 }
 0xa1e   :  { %v1897_v20 = vpop.eup %1896 }
 0xa1f   :  { %v699_v26 = vsub.f32 1.0, %v1897_v20  ;;  %v707_v28 = vmul.f32 %v1897_v20, %v705_v44 }
 0xa77   :  { %v690_v21 = vpop.permute.xlu0 %689 }
 0xa78   :  { %v692_v22 = vmul.f32 %v1897_v20, %v690_v21 }
 0xa7a   :  { %694 = vrot.lane.b32.xlu1 %v692_v22, %s1926_s30 }
 0xaec   :  { %v695_v23 = vpop.permute.xlu1 %694 }
 0xaed   :  { %v697_v24 = vadd.f32 %v695_v23, %v2065_v43 }
 0xaef   :  { %1898 = vtanh.f32 %v697_v24 }
 0xaf9   :  { %v1899_v25 = vpop.eup %1898 }
 0xafa   :  { %701 = vrot.lane.b32.xlu0 %v1899_v25, %s1929_s13 }
 0xb6c   :  { %v702_v27 = vpop.permute.xlu0 %701 }
 0xb6d   :  { %v704_v30 = vmul.f32 %v702_v27, %v699_v26 }
 0xb6f   :  { %v2291_v31 = vadd.f32 %v707_v28, %v704_v30 }
 0xb71   :  { %v724_v33 = vrot.slane %v2291_v31, 6 }
 0xb73   :  { %725 = vrot.lane.b32.xlu1 %v724_v33, %s1929_s13 }
 0xbe5   :  { %v726_v34 = vpop.permute.xlu1 %725 }
 0xbe6   :  { %1576 = vmatmul.mubr.msk.f32.vlgmr.msra.gmra.mrb[4].mxu1 %vm150_vm1, %v726_v34 }
 0xbe7   :  { %1822 = vmatpush3.bf16.xpose.msk.msra.mxu1 %vm1990_vm2, %v2083_v56  ;;  %1629 = vmatprep.mubr.msk.f32.mxu1 %vm1928_vm6, %v1925_v32 }
 0xbe8   :  { %1823 = vmatprep.subr.bf16.mxu1 %v1927_v53 }
 0xbef   :  { %1826 = vmatpush3.bf16.xpose.msk.msra.mxu1 %vm1990_vm2, %v2102_v59 }
 0xbf0   :  { %1827 = vmatprep.subr.bf16.mxu1 %v1927_v53 }
 0xbf7   :  { %1830 = vmatpush3.bf16.xpose.msk.msra.mxu1 %vm1990_vm2, %v2119_v63 }
 0xbf8   :  { %1831 = vmatprep.subr.bf16.mxu1 %v1927_v53 }
 0xbff   :  { %1834 = vmatpush3.bf16.xpose.msk.msra.mxu1 %vm1990_vm2, %v2135_v2 }
 0xc00   :  { %1835 = vmatprep.subr.bf16.mxu1 %v1927_v53 }
 0xc07   :  { %1838 = vmatpush3.bf16.xpose.msk.msra.mxu1 %vm1990_vm2, %v2151_v5 }
 0xc08   :  { %1839 = vmatprep.subr.bf16.mxu1 %v1927_v53 }
 0xc0f   :  { %1842 = vmatpush3.bf16.xpose.msk.msra.mxu1 %vm1990_vm2, %v2167_v8 }
 0xcb9   :  { %v795_v43 = vpop.f32.mrb[4].mxu1 }
 0xcba   :  { %v806_v35 = vadd.f32 %v2054_v36, %v795_v43  ;;  %v1577_v38 = vpop.f32.mrb[5].mxu1  ;;  %v799_v40 = vadd.f32 %v795_v43, %v2325_v39 }
 0xcbc   :  { %808 = vrot.lane.b32.xlu0 %v806_v35, %s1926_s30  ;;  %v1281_v42 = vmul.f32 -1.442695, %v799_v40 }
 0xcbe   :  { %1900 = vpow2.f32 %v1281_v42 }
 0xcc8   :  { %v1901_v45 = vpop.eup %1900 }
 0xcc9   :  { %v803_v46 = vadd.f32 1.0, %v1901_v45 }
 0xccb   :  { %1902 = vrcp.f32 %v803_v46 }
 0xcd5   :  { %v1903_v47 = vpop.eup %1902 }
 0xcd6   :  { %v818_v54 = vsub.f32 1.0, %v1903_v47  ;;  %v825_v57 = vmul.f32 %v1903_v47, %v724_v33 }
 0xd2e   :  { %v809_v48 = vpop.permute.xlu0 %808 }
 0xd2f   :  { %v811_v49 = vmul.f32 %v1903_v47, %v809_v48 }
 0xd31   :  { %813 = vrot.lane.b32.xlu1 %v811_v49, %s1926_s30 }
 0xda3   :  { %v814_v50 = vpop.permute.xlu1 %813 }
 0xda4   :  { %v816_v51 = vadd.f32 %v814_v50, %v2063_v41 }
 0xda6   :  { %1904 = vtanh.f32 %v816_v51 }
 0xdb0   :  { %v1905_v52 = vpop.eup %1904 }
 0xdb1   :  { %820 = vrot.lane.b32.xlu0 %v1905_v52, %s1929_s13 }
 0xe23   :  { %v821_v55 = vpop.permute.xlu0 %820 }
 0xe24   :  { %v823_v58 = vmul.f32 %v821_v55, %v818_v54 }
 0xe26   :  { %v2331_v60 = vadd.f32 %v825_v57, %v823_v58 }
 0xe28   :  { %839 = vrot.lane.b32.xlu1 %v2331_v60, %s1929_s13  ;;  %v942_v10 = vrot.slane %v2331_v60, 6 }
 0xe9a   :  { %v840_v61 = vpop.permute.xlu1 %839 }
 0xe9b   :  { %1603 = vmatmul.mubr.msk.f32.vlgmr.msra.gmra.mrb[6].mxu0 %vm150_vm1, %v840_v61 }
 0xe9c   :  { %1846 = vmatpush3.bf16.xpose.msk.msra.mxu0 %vm1990_vm2, %v2083_v56  ;;  %1656 = vmatprep.mubr.msk.f32.mxu0 %vm1928_vm6, %v1925_v32 }
 0xe9d   :  { %1847 = vmatprep.subr.bf16.mxu0 %v1927_v53 }
 0xea4   :  { %1850 = vmatpush3.bf16.xpose.msk.msra.mxu0 %vm1990_vm2, %v2102_v59 }
 0xea5   :  { %1851 = vmatprep.subr.bf16.mxu0 %v1927_v53 }
 0xeac   :  { %1854 = vmatpush3.bf16.xpose.msk.msra.mxu0 %vm1990_vm2, %v2119_v63 }
 0xead   :  { %1855 = vmatprep.subr.bf16.mxu0 %v1927_v53 }
 0xeb4   :  { %1858 = vmatpush3.bf16.xpose.msk.msra.mxu0 %vm1990_vm2, %v2135_v2 }
 0xeb5   :  { %1859 = vmatprep.subr.bf16.mxu0 %v1927_v53 }
 0xebc   :  { %1862 = vmatpush3.bf16.xpose.msk.msra.mxu0 %vm1990_vm2, %v2151_v5 }
 0xebd   :  { %1863 = vmatprep.subr.bf16.mxu0 %v1927_v53 }
 0xec4   :  { %1866 = vmatpush3.bf16.xpose.msk.msra.mxu0 %vm1990_vm2, %v2167_v8 }
 0xf6e   :  { %v909_v32 = vpop.f32.mrb[6].mxu0 }
 0xf6f   :  { %v923_v56 = vadd.f32 %v2054_v36, %v909_v32  ;;  %v1604_v59 = vpop.f32.mrb[7].mxu0  ;;  %v914_v2 = vrot.slane %v909_v32, 6  ;;  %v1930_v32 = vmov 1983009808  }
 0xf71   :  { %v925_v63 = vrot.slane %v923_v56, 6  ;;  %v916_v62 = vadd.f32 %v914_v2, %v2325_v39  ;;  %v313_v56 = vunpack.c.l.s4 %v1930_v32 }
 0xf73   :  { %926 = vrot.lane.b32.xlu0 %v925_v63, %s1926_s30  ;;  %v1295_v0 = vmul.f32 -1.442695, %v916_v62  ;;  %v314_v59 = vunpack.c.0.s8 %v313_v56  ;;  %v316_v63 = vshrl.u32 %v25_v29, 7 }
 0xf75   :  { %1906 = vpow2.f32 %v1295_v0 }
 0xf7f   :  { %v1907_v1 = vpop.eup %1906 }
 0xf80   :  { %v920_v5 = vadd.f32 1.0, %v1907_v1  ;;  %v710_v1 = vcombine.high %v2291_v31, %v2291_v31 }
 0xf82   :  { %1908 = vrcp.f32 %v920_v5  ;;  %v588_v5 = vcombine.high %v2253_v4, %v2253_v4 }
 0xf8c   :  { %v1909_v53 = vpop.eup %1908 }
 0xf8d   :  { %v936_v9 = vsub.f32 1.0, %v1909_v53  ;;  %v944_v15 = vmul.f32 %v1909_v53, %v942_v10 }
 0xfe5   :  { %v927_v3 = vpop.permute.xlu0 %926 }
 0xfe6   :  { %v929_v6 = vmul.f32 %v1909_v53, %v927_v3 }
 0xfe8   :  { %931 = vrot.lane.b32.xlu1 %v929_v6, %s1926_s30 }
0x105a   :  { %v932_v12 = vpop.permute.xlu1 %931 }
0x105b   :  { %v934_v8 = vadd.f32 %v932_v12, %v2063_v41 }
0x105d   :  { %1910 = vtanh.f32 %v934_v8 }
0x1067   :  { %v1911_v7 = vpop.eup %1910 }
0x1068   :  { %938 = vrot.lane.b32.xlu0 %v1911_v7, %s1929_s13 }
0x10da   :  { %v939_v13 = vpop.permute.xlu0 %938 }
0x10db   :  { %v941_v14 = vmul.f32 %v939_v13, %v936_v9 }
0x10dd   :  { %v2368_v16 = vadd.f32 %v944_v15, %v941_v14 }
0x10df   :  { %v957_v17 = vrot.slane %v2368_v16, 2  ;;  %v1061_v38 = vrot.slane %v2368_v16, 6 }
0x10e1   :  { %958 = vrot.lane.b32.xlu1 %v957_v17, %s1929_s13 }
0x1153   :  { %v959_v18 = vpop.permute.xlu1 %958 }
0x1154   :  { %1630 = vmatmul.mubr.msk.f32.vlgmr.msra.gmra.mrb[6].mxu1 %vm150_vm1, %v959_v18 }
0x1227   :  { %v1028_v19 = vpop.f32.mrb[6].mxu1 }
0x1228   :  { %v1042_v20 = vadd.f32 %v2054_v36, %v1028_v19  ;;  %v1631_v21 = vpop.f32.mrb[7].mxu1  ;;  %v1033_v23 = vrot.slane %v1028_v19, 4 }
0x122a   :  { %v1044_v22 = vrot.slane %v1042_v20, 4  ;;  %v1035_v24 = vadd.f32 %v1033_v23, %v2325_v39 }
0x122c   :  { %1045 = vrot.lane.b32.xlu0 %v1044_v22, %s1926_s30  ;;  %v1309_v25 = vmul.f32 -1.442695, %v1035_v24 }
0x122e   :  { %1912 = vpow2.f32 %v1309_v25 }
0x1238   :  { %v1913_v26 = vpop.eup %1912 }
0x1239   :  { %v1039_v44 = vadd.f32 1.0, %v1913_v26 }
0x123b   :  { %1914 = vrcp.f32 %v1039_v44 }
0x1245   :  { %v1915_v27 = vpop.eup %1914 }
0x1246   :  { %v1055_v35 = vsub.f32 1.0, %v1915_v27  ;;  %v1063_v42 = vmul.f32 %v1915_v27, %v1061_v38 }
0x129e   :  { %v1046_v28 = vpop.permute.xlu0 %1045 }
0x129f   :  { %v1048_v30 = vmul.f32 %v1915_v27, %v1046_v28 }
0x12a1   :  { %1050 = vrot.lane.b32.xlu1 %v1048_v30, %s1926_s30 }
0x1313   :  { %v1051_v33 = vpop.permute.xlu1 %1050 }
0x1314   :  { %v1053_v34 = vadd.f32 %v1051_v33, %v2063_v41 }
0x1316   :  { %1916 = vtanh.f32 %v1053_v34 }
0x1320   :  { %v1917_v43 = vpop.eup %1916 }
0x1321   :  { %1057 = vrot.lane.b32.xlu0 %v1917_v43, %s1929_s13 }
0x1393   :  { %v1058_v40 = vpop.permute.xlu0 %1057 }
0x1394   :  { %v1060_v45 = vmul.f32 %v1058_v40, %v1055_v35 }
0x1396   :  { %v2380_v46 = vadd.f32 %v1063_v42, %v1060_v45 }
0x1398   :  { %v1078_v47 = vrot.slane %v2380_v46, 4  ;;  %v1066_v9 = vcombine.high %v2380_v46, %v2380_v46  ;;  %v1182_v14 = vrot.slane %v2380_v46, 6 }
0x139a   :  { %1079 = vrot.lane.b32.xlu1 %v1078_v47, %s1929_s13 }
0x140c   :  { %v1080_v48 = vpop.permute.xlu1 %1079 }
0x140d   :  { %1657 = vmatmul.mubr.msk.f32.vlgmr.msra.gmra.mrb[8].mxu0 %vm150_vm1, %v1080_v48 }
0x14e0   :  { %v1149_v49 = vpop.f32.mrb[8].mxu0 }
0x14e1   :  { %v1163_v50 = vadd.f32 %v2054_v36, %v1149_v49  ;;  %v1658_v51 = vpop.f32.mrb[9].mxu0  ;;  %v1154_v54 = vrot.slane %v1149_v49, 2  ;;  %v317_v36 = vsub.s32 %v314_v59, %v316_v63 }
0x14e3   :  { %v1165_v52 = vrot.slane %v1163_v50, 2  ;;  %v1156_v55 = vadd.f32 %v1154_v54, %v2325_v39  ;;  %v318_v39 = vrot.slane %v2177_v11, %v317_v36  ;;  %v595_v53 = vrot.slane %v588_v5, %v317_v36 }
0x14e4   :  { %v717_v3 = vrot.slane %v710_v1, %v317_v36  ;;  %v474_v6 = vrot.slane %v2215_v37, %v317_v36  ;;  %v834_v7 = vrot.slane %v2331_v60, %v317_v36  ;;  %v1073_v10 = vrot.slane %v1066_v9, %v317_v36 }
0x14e5   :  { %1166 = vrot.lane.b32.xlu0 %v1165_v52, %s1926_s30  ;;  %v1323_v57 = vmul.f32 -1.442695, %v1156_v55  ;;  %v953_v15 = vrot.slane %v2368_v16, %v317_v36 }
0x14e6   :  { %v718_v29 = vcombine.high %v717_v3, %v717_v3  ;;  %v475_v11 = vcombine.high %v474_v6, %v474_v6 }
0x14e7   :  { %1918 = vpow2.f32 %v1323_v57  ;;  %v954_v21 = vcombine.high %v953_v15, %v953_v15 }
0x14f1   :  { %v1919_v58 = vpop.eup %1918 }
0x14f2   :  { %v1160_v61 = vadd.f32 1.0, %v1919_v58 }
0x14f4   :  { %1920 = vrcp.f32 %v1160_v61 }
0x14fe   :  { %v1921_v2 = vpop.eup %1920 }
0x14ff   :  { %v1176_v13 = vsub.f32 1.0, %v1921_v2  ;;  %v1184_v18 = vmul.f32 %v1921_v2, %v1182_v14 }
0x1557   :  { %v1167_v62 = vpop.permute.xlu0 %1166 }
0x1558   :  { %v1169_v0 = vmul.f32 %v1921_v2, %v1167_v62 }
0x155a   :  { %1171 = vrot.lane.b32.xlu1 %v1169_v0, %s1926_s30 }
0x155e   :  { %319 = vrot.lane.b32.xlu1 %v318_v39, %s1929_s13 }
0x1562   :  { %596 = vrot.lane.b32.xlu1 %v595_v53, %s1931_s3 }
0x1566   :  { %719 = vrot.lane.b32.xlu1 %v718_v29, %s1926_s30 }
0x15cc   :  { %v1172_v12 = vpop.permute.xlu1 %1171 }
0x15cd   :  { %v1174_v8 = vadd.f32 %v1172_v12, %v2063_v41 }
0x15cf   :  { %1922 = vtanh.f32 %v1174_v8 }
0x15d0   :  { %v320_v31 = vpop.permute.xlu1 %319 }
0x15d1   :  { %323 = vst.msk [vmem:[%s2445_s6] sm:$0x3] %vm322_vm7, %v320_v31 }
0x15d2   :  { %478 = vst.msk [vmem:[%s2445_s6] sm:$0x3] %vm477_vm8, %v475_v11 }
0x15d4   :  { %v597_v37 = vpop.permute.xlu1 %596 }
0x15d5   :  { %600 = vst.msk [vmem:[%s2445_s6] sm:$0x3] %vm599_vm9, %v597_v37 }
0x15d8   :  { %v720_v41 = vpop.permute.xlu1 %719 }
0x15d9   :  { %v1923_v4 = vpop.eup %1922  ;;  %723 = vst.msk [vmem:[%s2445_s6] sm:$0x3] %vm722_vm10, %v720_v41 }
0x15da   :  { %1178 = vrot.lane.b32.xlu0 %v1923_v4, %s1929_s13 }
0x15de   :  { %835 = vrot.lane.b32.xlu0 %v834_v7, %s1929_s13 }
0x15e2   :  { %1074 = vrot.lane.b32.xlu0 %v1073_v10, %s1931_s3 }
0x164c   :  { %v1179_v17 = vpop.permute.xlu0 %1178 }
0x164d   :  { %v1181_v19 = vmul.f32 %v1179_v17, %v1176_v13 }
0x164f   :  { %v1185_v20 = vadd.f32 %v1184_v18, %v1181_v19 }
0x1650   :  { %v836_v22 = vpop.permute.xlu0 %835 }
0x1651   :  { %v1187_v23 = vcombine.high %v1185_v20, %v1185_v20  ;;  %838 = vst.msk [vmem:[%s2445_s6 + $0x2] sm:$0x3] %vm322_vm7, %v836_v22 }
0x1652   :  { %956 = vst.msk [vmem:[%s2445_s6 + $0x2] sm:$0x3] %vm477_vm8, %v954_v21 }
0x1653   :  { %v1194_v60 = vrot.slane %v1187_v23, %v317_v36 }
0x1654   :  { %v1075_v24 = vpop.permute.xlu0 %1074 }
0x1655   :  { %1077 = vst.msk [vmem:[%s2445_s6 + $0x2] sm:$0x3] %vm599_vm9, %v1075_v24  ;;  %v1195_v16 = vcombine.high %v1194_v60, %v1194_v60 }
0x1657   :  { %1196 = vrot.lane.b32.xlu0 %v1195_v16, %s1926_s30 }
0x16c9   :  { %v1197_v25 = vpop.permute.xlu0 %1196 }
0x16ca   :  { %1199 = vst.msk [vmem:[%s2445_s6 + $0x2] sm:$0x3] %vm722_vm10, %v1197_v25 }

</bundles_post_ra>
